<compile_context>
chip_gen: v6e
topology: v6e:2x2x1
jax: 0.10.0
libtpu: 0.0.40
codegen_flags: <defaults>
</compile_context>

<pallas_src>
import math
import functools
import numpy as np

import jax
import jax.numpy as jnp
from jax.experimental import pallas as pl
from jax.experimental.pallas import tpu as pltpu

EMBED_MAX = 4.5551
EMBED_MIN = -4.5259
MAX_LEN = 64
OUT_TILE_N = 2048          # bf16 weight slab = 2048*2048*2 B = 8 MiB (x2 buffers = 16 MiB)


# ----------------------------------------------------------------------------
# Bicubic interpolation matrix (matches torch upsample_bicubic2d, align_corners=False)
# ----------------------------------------------------------------------------
def _cubic_weights(t, a=-0.75):
    def c1(x):  # |x| <= 1
        return ((a + 2.0) * x - (a + 3.0)) * x * x + 1.0

    def c2(x):  # 1 < |x| < 2
        return (((a * x - 5.0 * a) * x + 8.0 * a) * x - 4.0 * a)

    return [c2(t + 1.0), c1(t), c1(1.0 - t), c2(2.0 - t)]


def bicubic_matrix(in_size, out_size):
    A = np.zeros((out_size, in_size), dtype=np.float64)
    scale = in_size / out_size
    for o in range(out_size):
        src = (o + 0.5) * scale - 0.5          # cubic source index, align_corners=False
        fl = math.floor(src)
        t = src - fl
        w = _cubic_weights(t)
        for j in range(4):
            idx = min(max(fl - 1 + j, 0), in_size - 1)   # border clamp
            A[o, idx] += w[j]
    return A.astype(np.float32)


def batch_block_mask(batch, seq):
    """Additive attention mask: 0 inside each batch's (seq x seq) block, -1e30 across."""
    blk = np.arange(batch * seq) // seq
    bias = np.where(blk[:, None] == blk[None, :], 0.0, -1e30).astype(np.float32)
    return jnp.asarray(bias)


# ----------------------------------------------------------------------------
# Pallas kernels
# ----------------------------------------------------------------------------
def noise_kernel(x_ref, wt_ref, b_ref, pe_ref, o_ref):
    # (B, noise) @ (noise, S0*H) + bias + flattened positional embedding
    y = jnp.dot(x_ref[...], wt_ref[...], preferred_element_type=jnp.float32)
    o_ref[...] = y + b_ref[...] + pe_ref[...]


def trunk_kernel(x_ref, mask1_ref, mask2_ref, up_ref, wproj_ref, bo_ref, ln1_ref,
                 w1_ref, b1_ref, w2_ref, b2_ref, ln2_ref, o_ref, *, num_heads, hidden):
    """Fused trunk: stage_1 (2 encoder blocks, S=16) -> bicubic 2x upsample ->
    stage_2 (2 encoder blocks, S=64). Activations carry the folded (batch*seq, H)
    layout throughout; attention stays per-batch via a block-diagonal additive mask."""
    H = hidden
    hd = H // num_heads

    def layer_norm(v, g, b):                      # torch LayerNorm, eps=1e-5
        mu = jnp.mean(v, axis=-1, keepdims=True)
        d = v - mu
        var = jnp.mean(d * d, axis=-1, keepdims=True)
        return d * jax.lax.rsqrt(var + 1e-5) * g + b

    def encoder_block(h, i, mask_bias):
        # fused projection: [ q (pre-scaled) | k | per-head (Wv @ Wo) ]  -> (R, 2H + nh*H)
        proj = jnp.dot(h, wproj_ref[i], preferred_element_type=jnp.float32)
        acc = None
        for hh in range(num_heads):                        # static unrolled, 2 matmuls/head
            q = proj[:, hh * hd:(hh + 1) * hd]             # (R, hd)
            k = proj[:, H + hh * hd: H + (hh + 1) * hd]    # (R, hd)
            vo = proj[:, 2 * H + hh * H: 2 * H + (hh + 1) * H]   # (R, H) = V @ Wo.T slice
            s = jax.lax.dot_general(q, k, (((1,), (1,)), ((), ())),
                                    preferred_element_type=jnp.float32)   # (R, R)
            s = s + mask_bias                              # keep attention within a batch
            s = s - jnp.max(s, axis=-1, keepdims=True)
            p = jnp.exp(s)
            p = p * pl.reciprocal(jnp.sum(p, axis=-1, keepdims=True), approx=True)
            contrib = jnp.dot(p, vo, preferred_element_type=jnp.float32)  # (R, H)
            acc = contrib if acc is None else acc + contrib
        attn = acc + bo_ref[i]
        r = attn + h                                       # residual around attention

        ln1 = ln1_ref[i]                                   # (2, H): [gamma; beta]
        n1 = layer_norm(r, ln1[0:1, :], ln1[1:2, :])

        # feed-forward: Linear -> ReLU -> Linear
        h1 = jnp.maximum(
            jnp.dot(n1, w1_ref[i], preferred_element_type=jnp.float32) + b1_ref[i], 0.0)
        ff = jnp.dot(h1, w2_ref[i], preferred_element_type=jnp.float32) + b2_ref[i]

        ln2 = ln2_ref[i]
        n2 = layer_norm(ff, ln2[0:1, :], ln2[1:2, :])
        return n2 + ff                                     # module does norm2(x) + x

    h = x_ref[...]                                         # (B*16, H)
    m1 = mask1_ref[...]
    h = encoder_block(h, 0, m1)
    h = encoder_block(h, 1, m1)
    # bicubic 2x upsample folded into kron(I_B, kron(A, A)) seq-mixing matmul
    h = jnp.dot(up_ref[...], h, preferred_element_type=jnp.float32)     # (B*64, H)
    m2 = mask2_ref[...]
    h = encoder_block(h, 2, m2)
    h = encoder_block(h, 3, m2)
    o_ref[...] = h


def output_kernel(x_ref, wt_ref, b_ref, o_ref):
    # (B, K) @ contiguous bf16 slab (K, tn); f32 accumulation; bias; Hardtanh
    xb = x_ref[...].astype(jnp.bfloat16)
    y = jnp.dot(xb, wt_ref[0], preferred_element_type=jnp.float32)
    o_ref[...] = jnp.clip(y + b_ref[...], EMBED_MIN, EMBED_MAX)


# ----------------------------------------------------------------------------
# Forward wrapper
# ----------------------------------------------------------------------------
def generator_forward(x, kp):
    B = x.shape[0]
    H = kp["hidden"]
    S0 = MAX_LEN // 4
    assert B == kp["batch"], "params were prepared for a different batch size"

    # 1) noise transform + positional embedding -> (B, S0*H)
    h = pl.pallas_call(
        noise_kernel,
        out_shape=jax.ShapeDtypeStruct((B, S0 * H), jnp.float32),
    )(x, kp["wn_t"], kp["bn"], kp["pe_flat"])
    h = h.reshape(B * S0, H)                     # row-major bitcast (free, outside kernel)

    # 2) fused trunk: stage_1 + upsample + stage_2
    trunk = functools.partial(trunk_kernel, num_heads=kp["num_heads"], hidden=H)
    h = pl.pallas_call(
        trunk,
        out_shape=jax.ShapeDtypeStruct((B * MAX_LEN, H), jnp.float32),
    )(h, kp["mask1"], kp["mask2"], kp["up_big"], kp["wproj"], kp["bo"],
      kp["ln1"], kp["w1"], kp["b1"], kp["w2"], kp["b2"], kp["ln2"])
    h = h.reshape(B, MAX_LEN * H)                # row-major bitcast (free, outside kernel)

    # 3) output Linear (bf16 weight, pre-tiled contiguous slabs) + Hardtanh
    K = MAX_LEN * H
    N = MAX_LEN * 256
    tn = OUT_TILE_N
    nt = N // tn
    out = pl.pallas_call(
        output_kernel,
        out_shape=jax.ShapeDtypeStruct((B, N), jnp.float32),
        grid=(nt,),
        in_specs=[pl.BlockSpec((B, K), lambda j: (0, 0)),
                  pl.BlockSpec((1, K, tn), lambda j: (j, 0, 0)),
                  pl.BlockSpec((1, tn), lambda j: (0, j))],
        out_specs=pl.BlockSpec((B, tn), lambda j: (0, j)),
        compiler_params=pltpu.CompilerParams(
            dimension_semantics=("parallel",),
            vmem_limit_bytes=32 * 1024 * 1024),
    )(h, kp["wout_bf16"], kp["bout"])
    return out


# ----------------------------------------------------------------------------
# Deterministic parameter init (shapes from Generator.__init__)
# ----------------------------------------------------------------------------
def init_generator_params(key, noise_dims, hidden_dims, num_heads=8, fwd_expand=4):
    def nrm(k, shape):
        return 0.02 * jax.random.normal(k, shape, jnp.float32)

    keys = iter(jax.random.split(key, 64))
    H, Dh = hidden_dims, hidden_dims // num_heads
    raw = {
        "Wn": nrm(next(keys), (MAX_LEN // 4 * H, noise_dims)),
        "bn": nrm(next(keys), (MAX_LEN // 4 * H,)),
        "pe": nrm(next(keys), (1, MAX_LEN // 4, H)),
        "blocks": [],
    }
    for _ in range(4):  # stage_1 (2 blocks) + stage_2 (2 blocks)
        raw["blocks"].append({
            "Wv": nrm(next(keys), (Dh, Dh)),
            "Wk": nrm(next(keys), (Dh, Dh)),
            "Wq": nrm(next(keys), (Dh, Dh)),
            "Wo": nrm(next(keys), (H, H)),
            "bo": nrm(next(keys), (H,)),
            "g1": jnp.ones((H,), jnp.float32),
            "be1": jnp.zeros((H,), jnp.float32),
            "W1": nrm(next(keys), (fwd_expand * H, H)),
            "b1": nrm(next(keys), (fwd_expand * H,)),
            "W2": nrm(next(keys), (H, fwd_expand * H)),
            "b2": nrm(next(keys), (H,)),
            "g2": jnp.ones((H,), jnp.float32),
            "be2": jnp.zeros((H,), jnp.float32),
        })
    raw["Wout"] = nrm(next(keys), (MAX_LEN * 256, MAX_LEN * H))
    raw["bout"] = nrm(next(keys), (MAX_LEN * 256,))
    return raw


def prepare_kernel_params(raw, hidden_dims, num_heads, batch_size):
    H = hidden_dims
    nh = num_heads
    hd = H // nh
    S0 = MAX_LEN // 4
    eye = jnp.eye(nh, dtype=jnp.float32)
    inv_sqrt = 1.0 / math.sqrt(float(H))        # softmax(qk / input_dims**0.5)

    def block_pack(b):
        Wq_bd = jnp.kron(eye, b["Wq"].T) * inv_sqrt     # attention scale folded into Wq
        Wk_bd = jnp.kron(eye, b["Wk"].T)
        Wv_bd = jnp.kron(eye, b["Wv"].T)
        WoT = b["Wo"].T
        # fold the output projection Wo into the V projection, per head
        Wvo = jnp.concatenate(
            [Wv_bd[:, h * hd:(h + 1) * hd] @ WoT[h * hd:(h + 1) * hd, :]
             for h in range(nh)], axis=1)               # (H, nh*H)
        return {
            "wproj": jnp.concatenate([Wq_bd, Wk_bd, Wvo], axis=1),   # (H, 2H + nh*H)
            "bo": b["bo"][None, :],
            "ln1": jnp.stack([b["g1"], b["be1"]]),
            "w1": b["W1"].T, "b1": b["b1"][None, :],
            "w2": b["W2"].T, "b2": b["b2"][None, :],
            "ln2": jnp.stack([b["g2"], b["be2"]]),
        }

    packs = [block_pack(b) for b in raw["blocks"]]
    stack = lambda name: jnp.stack([p[name] for p in packs])         # leading dim = 4 blocks

    A = jnp.asarray(bicubic_matrix(4, 8))        # (8, 4) 1-D bicubic operator
    up2d = jnp.kron(A, A)                        # (64, 16) 2-D bicubic operator

    # output Linear: bf16 weight, pre-tiled into contiguous (NT, K, TN) slabs so each
    # grid step DMAs one fully-contiguous slab (no strided HBM reads)
    K = MAX_LEN * H
    N = MAX_LEN * 256
    assert N % OUT_TILE_N == 0
    NT = N // OUT_TILE_N
    wout_tiled = (raw["Wout"].T.reshape(K, NT, OUT_TILE_N)
                  .transpose(1, 0, 2).astype(jnp.bfloat16))          # (NT, K, TN)

    return {
        "hidden": H,
        "num_heads": nh,
        "batch": batch_size,
        "wn_t": raw["Wn"].T,
        "bn": raw["bn"][None, :],
        "pe_flat": raw["pe"].reshape(1, -1),
        "wproj": stack("wproj"),                 # (4, H, 2H + nh*H)
        "bo": stack("bo"),                       # (4, 1, H)
        "ln1": stack("ln1"),                     # (4, 2, H)
        "w1": stack("w1"),                       # (4, H, 4H)
        "b1": stack("b1"),                       # (4, 1, 4H)
        "w2": stack("w2"),                       # (4, 4H, H)
        "b2": stack("b2"),                       # (4, 1, H)
        "ln2": stack("ln2"),                     # (4, 2, H)
        "up_m": up2d,                            # kept for the reference
        "up_big": jnp.kron(jnp.eye(batch_size, dtype=jnp.float32), up2d),  # (B*64, B*16)
        "mask1": batch_block_mask(batch_size, S0),
        "mask2": batch_block_mask(batch_size, MAX_LEN),
        "wout_bf16": wout_tiled,
        "bout": raw["bout"][None, :],
    }


# ----------------------------------------------------------------------------
# Pure-JAX reference (mirrors the PyTorch forward exactly, f32 throughout)
# ----------------------------------------------------------------------------
def reference_forward(x, raw, hidden_dims, num_heads, up_m):
    B, H = x.shape[0], hidden_dims

    def ln(v, g, b):
        mu = v.mean(-1, keepdims=True)
        var = ((v - mu) ** 2).mean(-1, keepdims=True)
        return (v - mu) / jnp.sqrt(var + 1e-5) * g + b

    def block(v, bp):
        Bn, S, _ = v.shape
        Dh = H // num_heads
        xh = v.reshape(Bn, S, num_heads, Dh)
        vv, kk, qq = xh @ bp["Wv"].T, xh @ bp["Wk"].T, xh @ bp["Wq"].T
        qk = jnp.einsum("bqhd,bkhd->bhqk", qq, kk)
        att = jax.nn.softmax(qk / (H ** 0.5), axis=3)
        av = jnp.einsum("bhql,blhd->bqhd", att, vv).reshape(Bn, S, H)
        a = av @ bp["Wo"].T + bp["bo"]
        r = ln(a + v, bp["g1"], bp["be1"])
        ff = jnp.maximum(r @ bp["W1"].T + bp["b1"], 0.0) @ bp["W2"].T + bp["b2"]
        return ln(ff, bp["g2"], bp["be2"]) + ff

    h = x @ raw["Wn"].T + raw["bn"]
    h = h.reshape(B, MAX_LEN // 4, H) + raw["pe"][:, :MAX_LEN // 4, :H]
    for bp in raw["blocks"][:2]:
        h = block(h, bp)
    h = jnp.einsum("os,bsc->boc", up_m, h)         # bicubic upsample (torch semantics)
    for bp in raw["blocks"][2:]:
        h = block(h, bp)
    h = h.reshape(B, MAX_LEN * H)
    return jnp.clip(h @ raw["Wout"].T + raw["bout"], EMBED_MIN, EMBED_MAX)


# ----------------------------------------------------------------------------
if __name__ == "__main__":
    noise_dims, hidden_dims, num_heads, batch = 16, 32, 8, 2

    key = jax.random.PRNGKey(0)
    k_param, k_x = jax.random.split(key)
    raw = init_generator_params(k_param, noise_dims, hidden_dims, num_heads)
    kp = prepare_kernel_params(raw, hidden_dims, num_heads, batch)

    x = jax.random.normal(k_x, (batch, noise_dims), jnp.float32)

    out = jax.block_until_ready(generator_forward(x, kp))
    assert out.shape == (batch, MAX_LEN * 256)

    ref = reference_forward(x, raw, hidden_dims, num_heads, kp["up_m"])
    # tolerance loosened vs. the pure-f32 reference because the output-layer weight and
    # activations run in bf16 (f32 accumulation) and softmax uses an approx reciprocal.
    np.testing.assert_allclose(np.asarray(out), np.asarray(ref), rtol=2e-2, atol=5e-2)

    print("KERNEL_OK")
</pallas_src>

<mosaic_0001>
module attributes {stable_mosaic.version = 11 : i64} {
  func.func @noise_kernel(%arg0: memref<2x16xf32, #tpu.memory_space<vmem>>, %arg1: memref<16x512xf32, #tpu.memory_space<vmem>>, %arg2: memref<1x512xf32, #tpu.memory_space<vmem>>, %arg3: memref<1x512xf32, #tpu.memory_space<vmem>>, %arg4: memref<2x512xf32, #tpu.memory_space<vmem>>) attributes {dimension_semantics = [], scalar_prefetch = 0 : i64, scratch_operands = 0 : i64, tpu.core_type = #tpu.core_type<tc>} {
    %c0 = arith.constant 0 : index
    %c0_0 = arith.constant 0 : index
    %0 = vector.load %arg0[%c0, %c0_0] : memref<2x16xf32, #tpu.memory_space<vmem>>, vector<2x16xf32>
    %c0_1 = arith.constant 0 : index
    %c0_2 = arith.constant 0 : index
    %1 = vector.load %arg1[%c0_1, %c0_2] : memref<16x512xf32, #tpu.memory_space<vmem>>, vector<16x512xf32>
    %cst = arith.constant dense<0.000000e+00> : vector<2x512xf32>
    %2 = tpu.matmul %0, %1, %cst {dimension_numbers = #tpu.dot_dimension_numbers<[1], [0], [0], [1], [0, 0, 1, 1], [], []>} : vector<2x16xf32>, vector<16x512xf32>, vector<2x512xf32> -> vector<2x512xf32>
    %c0_3 = arith.constant 0 : index
    %c0_4 = arith.constant 0 : index
    %3 = vector.load %arg2[%c0_3, %c0_4] : memref<1x512xf32, #tpu.memory_space<vmem>>, vector<1x512xf32>
    %4 = vector.broadcast %3 : vector<1x512xf32> to vector<2x512xf32>
    %5 = arith.addf %2, %4 : vector<2x512xf32>
    %c0_5 = arith.constant 0 : index
    %c0_6 = arith.constant 0 : index
    %6 = vector.load %arg3[%c0_5, %c0_6] : memref<1x512xf32, #tpu.memory_space<vmem>>, vector<1x512xf32>
    %7 = vector.broadcast %6 : vector<1x512xf32> to vector<2x512xf32>
    %8 = arith.addf %5, %7 : vector<2x512xf32>
    %c0_7 = arith.constant 0 : index
    %c0_8 = arith.constant 0 : index
    %9 = vector.load %arg4[%c0_7, %c0_8] : memref<2x512xf32, #tpu.memory_space<vmem>>, vector<2x512xf32>
    tpu.vector_store %arg4[%c0_7, %c0_8], %8 {strides = array<i32>} : memref<2x512xf32, #tpu.memory_space<vmem>>, vector<2x512xf32>,
    return
  }
}

</mosaic_0001>

<bundles_post_ra>
// kernel: tpu_custom_call.1
= control target key start
LH: loop header
LB: loop body
LE: loop exit
PB: predicated region body
PF: predicated region fallthrough
CT: control target
= control target key end

     0   :  { %9 = vsyncpa [#allocation3], 0  ;;  %s441_s0 = inlined_call_operand.hbm [shape: f32[2,16], index: 0, kind: input, shape index: {}]   ;;  %s442_s1 = inlined_call_operand.hbm [shape: f32[16,512], index: 1, kind: input, shape index: {}]   ;;  %s443_s2 = inlined_call_operand.hbm [shape: f32[1,512], index: 2, kind: input, shape index: {}]   ;;  %s444_s3 = inlined_call_operand.vmem [shape: f32[1,512], index: 3, kind: input, shape index: {}]   ;;  %s445_s4 = inlined_call_operand.hbm [shape: f32[2,512], index: 4, kind: output, shape index: {}]  }
   0x1   :  { %10 = vsyncpa [#allocation6], 0 }
   0x2   :  { %11 = vsyncpa [#allocation4], 0  ;;  %s393_s15 = smov [#allocation5]  }
   0x3   :  { %s27_s16 = sshll.u32 %s393_s15, 4  ;;  %s28_s16 = int_to_ptr.vmem [resolvable:$true] %s27_s16 }
   0x4   :  { %s315_s17 = scalar_lea.vmem %s28_s16, 1024  ;;  %p320_p1 = scmp.lt.s32.totalorder %s28_s16, %s28_s16 }
   0x5   :  { %p316_p0 = scmp.ne.s32.totalorder %s28_s16, %s315_s17  ;;  %p321_p2 = scmp.lt.s32.totalorder %s315_s17, %s315_s17 }
   0x7   :  { %p322_p3 = por %p321_p2, %p320_p1 }
   0x9   :  { %p323_p4 = pnand %p322_p3, %p316_p0 }
   0xb   :  { %326 = shalt.err (!%p323_p4)
}
   0xc   :  { %s394_s18 = smov 512   ;;  %s395_s19 = smov 32  }
   0xd   :  { %33 = dma.hbm_to_vmem [thread:$0]  %s442_s1, 1024, %s28_s16, [#allocation6], %s394_s18, %s394_s18, %s395_s19  }
   0xe   :  { %s396_s22 = smov [#allocation2]   ;;  %s397_s24 = smov [#allocation7]  }
   0xf   :  { %s18_s23 = sshll.u32 %s396_s22, 4  ;;  %s40_s25 = sshll.u32 %s397_s24, 4  ;;  %s19_s23 = int_to_ptr.vmem [resolvable:$true] %s18_s23  ;;  %s41_s25 = int_to_ptr.vmem [resolvable:$true] %s40_s25 }
  0x10   :  { %s335_s26 = scalar_lea.vmem %s19_s23, 32  ;;  %p340_p6 = scmp.lt.s32.totalorder %s19_s23, %s19_s23 }
  0x11   :  { %p336_p5 = scmp.ne.s32.totalorder %s19_s23, %s335_s26  ;;  %p341_p7 = scmp.lt.s32.totalorder %s335_s26, %s335_s26 }
  0x13   :  { %p342_p8 = por %p341_p7, %p340_p6 }
  0x15   :  { %p343_p9 = pnand %p342_p8, %p336_p5 }
  0x17   :  { %346 = shalt.err (!%p343_p9)
}
  0x18   :  { %21 = dma.hbm_to_vmem [thread:$0]  %s441_s0, 32, %s19_s23, [#allocation3]  }
  0x19   :  { %s355_s29 = scalar_lea.vmem %s41_s25, 64  ;;  %p360_p11 = scmp.lt.s32.totalorder %s41_s25, %s41_s25 }
  0x1a   :  { %p356_p10 = scmp.ne.s32.totalorder %s41_s25, %s355_s29  ;;  %p361_p12 = scmp.lt.s32.totalorder %s355_s29, %s355_s29 }
  0x1c   :  { %p362_p13 = por %p361_p12, %p360_p11 }
  0x1e   :  { %p363_p0 = pnand %p362_p13, %p356_p10 }
  0x20   :  { %366 = shalt.err (!%p363_p0)
}
  0x21   :  { %43 = dma.hbm_to_vmem [thread:$0]  %s443_s2, 64, %s41_s25, [#allocation6]  }
  0x22   :  { %387 = dma.done.wait [#allocation3], 32  }
  0x23   :  { %388 = vsyncadd [#allocation3], 4294967264 }
  0x24   :  { %389 = dma.done.wait [#allocation6], 1088  }
  0x25   :  { %390 = vsyncadd [#allocation6], 4294966208  ;;  %v398_v0 = vmov 0.0   ;;  %v61_v1 = vld [vmem:[#allocation5 + $0x28] sm:$0xff]  ;;  %v63_v2 = vld [vmem:[#allocation5 + $0x38] sm:$0xff]  ;;  %vm86_vm0 = vcmask 130048   ;;  %v66_v10 = vlaneseq }
  0x26   :  { %154 = vmatprep.mubr.f32.mxu0 %v398_v0  ;;  %225 = vmatprep.mubr.f32.mxu1 %v398_v0  ;;  %v60_v3 = vld [vmem:[#allocation5 + $0x20] sm:$0xff]  ;;  %v62_v4 = vld [vmem:[#allocation5 + $0x30] sm:$0xff]  ;;  %v57_v5 = vld [vmem:[#allocation5 + $0x8] sm:$0xff]  ;;  %v399_v17 = vmov 1983009808  }
  0x27   :  { %118 = vmatprep.subr.mxu0 %v61_v1  ;;  %189 = vmatprep.subr.mxu1 %v63_v2  ;;  %v59_v6 = vld [vmem:[#allocation5 + $0x18] sm:$0xff]  ;;  %v56_v7 = vld [vmem:[#allocation5] sm:$0xff]  ;;  %v58_v8 = vld [vmem:[#allocation5 + $0x10] sm:$0xff]  ;;  %v67_v11 = vshrl.u32 %v66_v10, 7  ;;  %v265_v18 = vunpack.c.l.s4 %v399_v17 }
  0x28   :  { %119 = vmatpush1.msra.mxu0 %v60_v3  ;;  %190 = vmatpush1.msra.mxu1 %v62_v4  ;;  %v55_v9 = vld [vmem:[#allocation2] sm:$0x3]  ;;  %v64_v14 = vld [vmem:[#allocation7] sm:$0xf] }
  0x29   :  { %120 = vmatprep.subr.mxu0 %v57_v5  ;;  %191 = vmatprep.subr.mxu1 %v59_v6  ;;  %v68_v12 = vsub.s32 0, %v67_v11  ;;  %v76_v13 = vsub.s32 2, %v67_v11  ;;  %v72_v15 = vsub.s32 1, %v67_v11  ;;  %v80_v16 = vsub.s32 3, %v67_v11  ;;  %v232_v20 = vld [vmem:[%s444_s3] sm:$0xf] }
  0x2a   :  { %121 = vmatpush1.msra.mxu0 %v56_v7  ;;  %192 = vmatpush1.msra.mxu1 %v58_v8  ;;  %v266_v28 = vunpack.c.0.s8 %v265_v18  ;;  %s400_s3 = smov [#allocation8]  }
  0x2b   :  { %297 = vmatmul.mubr.msk.f32.vlgmr.msra.gmra.mxu0 %vm86_vm0, %v55_v9  ;;  %298 = vmatmul.mubr.msk.f32.vlgmr.msra.gmra.mxu1 %vm86_vm0, %v55_v9  ;;  %v69_v19 = vrot.slane %v64_v14, %v68_v12  ;;  %v77_v21 = vrot.slane %v64_v14, %v76_v13  ;;  %v73_v22 = vrot.slane %v64_v14, %v72_v15  ;;  %s287_s5 = sshll.u32 %s400_s3, 4  ;;  %s288_s5 = int_to_ptr.vmem [resolvable:$true] %s287_s5 }
  0x2c   :  { %v81_v23 = vrot.slane %v64_v14, %v80_v16  ;;  %v237_v25 = vrot.slane %v232_v20, %v68_v12  ;;  %v245_v27 = vrot.slane %v232_v20, %v76_v13  ;;  %v241_v31 = vrot.slane %v232_v20, %v72_v15  ;;  %s367_s6 = scalar_lea.vmem %s288_s5, 128  ;;  %p372_p2 = scmp.lt.s32.totalorder %s288_s5, %s288_s5 }
  0x2d   :  { %v249_v32 = vrot.slane %v232_v20, %v80_v16  ;;  %v269_v37 = vsub.s32 %v266_v28, %v67_v11  ;;  %p368_p1 = scmp.ne.s32.totalorder %s288_s5, %s367_s6  ;;  %p373_p3 = scmp.lt.s32.totalorder %s367_s6, %s367_s6 }
  0x2f   :  { %p374_p4 = por %p373_p3, %p372_p2 }
  0x31   :  { %p375_p5 = pnand %p374_p4, %p368_p1 }
  0xeb   :  { %v156_v24 = vpop.f32.mrf.mxu0  ;;  %v227_v26 = vpop.f32.mrf.mxu1 }
  0xec   :  { %v157_v29 = vadd.f32 %v156_v24, %v69_v19  ;;  %v228_v30 = vadd.f32 %v227_v26, %v77_v21 }
  0xed   :  { %v158_v33 = vpop.f32.mrf.mxu0  ;;  %v229_v34 = vpop.f32.mrf.mxu1 }
  0xee   :  { %v159_v35 = vadd.f32 %v158_v33, %v73_v22  ;;  %v230_v36 = vadd.f32 %v229_v34, %v81_v23  ;;  %v254_v38 = vadd.f32 %v237_v25, %v157_v29  ;;  %v256_v39 = vadd.f32 %v245_v27, %v228_v30 }
  0xf0   :  { %v255_v40 = vadd.f32 %v241_v31, %v159_v35  ;;  %v257_v41 = vadd.f32 %v249_v32, %v230_v36 }
  0xf2   :  { %v262_v42 = vcombine.low %v254_v38, %v255_v40  ;;  %v263_v43 = vcombine.low %v256_v39, %v257_v41 }
  0xf4   :  { %v270_v44 = vrot.slane %v262_v42, %v269_v37  ;;  %v277_v45 = vrot.slane %v263_v43, %v269_v37 }
  0xf6   :  { %v278_v46 = vcombine.low %v270_v44, %v277_v45 }
  0xf8   :  { %280 = vst [vmem:[#allocation8] sm:$0xff] %v278_v46 }
  0xf9   :  { %378 = shalt.err (!%p375_p5)
}
  0xfa   :  { %290 = dma.vmem_to_hbm [thread:$0]  %s288_s5, 128, %s445_s4, [#allocation4]  }
  0xfb   :  { %391 = dma.done.wait [#allocation4], 128  }
  0xfc   :  { %392 = vsyncadd [#allocation4], 4294967168 }
  0xfd   :  { %294 = vsyncpa [#allocation3], 1 }
  0xfe   :  { %295 = vsyncpa [#allocation6], 1 }
  0xff   :  { %296 = vsyncpa [#allocation4], 1 }

</bundles_post_ra>
